<compile_context>
chip_gen: v7x
topology: tpu7x:2x2x1
jax: 0.10.0
libtpu: 0.0.40
codegen_flags: <defaults>
</compile_context>

<pallas_src>
import functools

import jax
import jax.numpy as jnp
from jax.experimental import pallas as pl
from jax.experimental.pallas import tpu as pltpu

_LANES = 128
_LOG_CLAMP = -100.0  # PyTorch F.binary_cross_entropy clamps log terms at -100


def _bce_kernel(p_ref, t_ref, out_ref, *, total_rows, tile_rows, with_logits):
    # p_ref / t_ref: (tile_rows, K) block of pred / target
    # out_ref:       (1, 128) per-tile partial-sum row (lane-dense)
    i = pl.program_id(0)

    p = p_ref[...].astype(jnp.float32)
    t = t_ref[...].astype(jnp.float32)

    # Mask rows of the (possibly ragged) tail tile; total_rows/tile_rows are static.
    row = jax.lax.broadcasted_iota(jnp.int32, p.shape, 0)
    valid = (i * tile_rows + row) < total_rows

    # Sanitize padded rows so log()/exp() never see undefined data (NaN hazard).
    p = jnp.where(valid, p, 0.5)
    t = jnp.where(valid, t, 0.5)

    if with_logits:
        # Stable BCE-with-logits: max(x,0) - x*t + log(1 + exp(-|x|))
        loss = jnp.maximum(p, 0.0) - p * t + jnp.log1p(jnp.exp(-jnp.abs(p)))
    else:
        logp = jnp.maximum(jnp.log(p), _LOG_CLAMP)
        log1mp = jnp.maximum(jnp.log1p(-p), _LOG_CLAMP)
        loss = -(t * logp + (1.0 - t) * log1mp)

    loss = jnp.where(valid, loss, 0.0)
    partial = jnp.sum(loss)  # single cross-lane reduce per tile (XLU)
    out_ref[...] = jnp.full((1, _LANES), partial, dtype=jnp.float32)


def edge_loss_vanila(pred, target, mode="normal"):
    """mode='normal'  -> F.binary_cross_entropy(pred, target)      (pred = probs)
       otherwise      -> F.binary_cross_entropy_with_logits(pred, target)"""
    assert pred.shape == target.shape
    if pred.ndim < 2:
        pred = pred.reshape(1, -1)
        target = target.reshape(1, -1)

    K = pred.shape[-1]
    # Merge leading dims only (keeps the last dim on lanes; no transpose/copy).
    p2 = pred.reshape(-1, K)
    t2 = target.reshape(-1, K)
    M = p2.shape[0]
    total_elems = M * K  # static numel -> mean divisor, no count accumulator

    # ~1 MiB of input per operand per grid step; keep sublane dim a multiple of 8.
    tile_rows = max(1, (1 << 20) // max(1, K * 4))
    if tile_rows >= M:
        tile_rows = M  # full-dim block is always legal
    else:
        tile_rows = max(8, (tile_rows // 8) * 8)
    grid = (pl.cdiv(M, tile_rows),)

    kernel = functools.partial(
        _bce_kernel,
        total_rows=M,
        tile_rows=tile_rows,
        with_logits=(mode != "normal"),
    )

    partials = pl.pallas_call(
        kernel,
        out_shape=jax.ShapeDtypeStruct((grid[0], _LANES), jnp.float32),
        grid_spec=pltpu.PrefetchScalarGridSpec(
            num_scalar_prefetch=0,
            grid=grid,
            in_specs=[
                pl.BlockSpec((tile_rows, K), lambda i: (i, 0)),
                pl.BlockSpec((tile_rows, K), lambda i: (i, 0)),
            ],
            out_specs=pl.BlockSpec((1, _LANES), lambda i: (i, 0)),
        ),
        compiler_params=pltpu.CompilerParams(
            dimension_semantics=("parallel",)),
    )(p2, t2)

    # Per-tile partials reduced by XLA (better precision than a serial scalar
    # accumulator, and it keeps the grid axis parallel for v7x megacore).
    return jnp.sum(partials[:, 0]) / total_elems


def _reference(pred, target, mode="normal"):
    p = pred.astype(jnp.float32)
    t = target.astype(jnp.float32)
    if mode == "normal":
        loss = -(t * jnp.maximum(jnp.log(p), _LOG_CLAMP)
                 + (1.0 - t) * jnp.maximum(jnp.log1p(-p), _LOG_CLAMP))
    else:
        loss = jnp.maximum(p, 0.0) - p * t + jnp.log1p(jnp.exp(-jnp.abs(p)))
    return jnp.mean(loss)


if __name__ == "__main__":
    key = jax.random.PRNGKey(0)
    k1, k2 = jax.random.split(key)

    N, C, H, W = 2, 4, 16, 16
    logits = jax.random.normal(k1, (N, C, H, W), dtype=jnp.float32)
    pred = jax.nn.sigmoid(logits)  # probabilities for mode='normal'
    target = (jax.random.uniform(k2, (N, C, H, W)) > 0.5).astype(jnp.float32)

    # mode='normal' (module default): F.binary_cross_entropy
    loss = edge_loss_vanila(pred, target, mode="normal")
    jax.block_until_ready(loss)
    ref = _reference(pred, target, mode="normal")
    assert jnp.allclose(loss, ref, rtol=1e-5, atol=1e-5), (loss, ref)

    # non-'normal' mode: F.binary_cross_entropy_with_logits
    loss_l = edge_loss_vanila(logits, target, mode="logits")
    jax.block_until_ready(loss_l)
    ref_l = _reference(logits, target, mode="logits")
    assert jnp.allclose(loss_l, ref_l, rtol=1e-5, atol=1e-5), (loss_l, ref_l)

    print("KERNEL_OK")
</pallas_src>

<mosaic_0001>
module attributes {stable_mosaic.version = 11 : i64} {
  func.func @_bce_kernel(%arg0: i32, %arg1: memref<128x16xf32, #tpu.memory_space<vmem>>, %arg2: memref<128x16xf32, #tpu.memory_space<vmem>>, %arg3: memref<1x128xf32, #tpu.memory_space<vmem>>) attributes {dimension_semantics = [#tpu.dimension_semantics<parallel>], iteration_bounds = array<i64: 1>, scalar_prefetch = 0 : i64, scratch_operands = 0 : i64, tpu.core_type = #tpu.core_type<tc>, window_params = [{transform_indices = @transform_0, window_bounds = array<i64: 128, 16>}, {transform_indices = @transform_1, window_bounds = array<i64: 128, 16>}, {transform_indices = @transform_2, window_bounds = array<i64: 1, 128>}]} {
    %c0 = arith.constant 0 : index
    %c0_0 = arith.constant 0 : index
    %0 = vector.load %arg1[%c0, %c0_0] : memref<128x16xf32, #tpu.memory_space<vmem>>, vector<128x16xf32>
    %c0_1 = arith.constant 0 : index
    %c0_2 = arith.constant 0 : index
    %1 = vector.load %arg2[%c0_1, %c0_2] : memref<128x16xf32, #tpu.memory_space<vmem>>, vector<128x16xf32>
    %2 = tpu.iota {dimensions = array<i32: 0>} : vector<128x16xi32>
    %c128_i32 = arith.constant 128 : i32
    %3 = arith.muli %arg0, %c128_i32 : i32
    %4 = vector.broadcast %3 : i32 to vector<128x16xi32>
    %5 = arith.addi %4, %2 : vector<128x16xi32>
    %c128_i32_3 = arith.constant 128 : i32
    %6 = vector.broadcast %c128_i32_3 : i32 to vector<128x16xi32>
    %7 = arith.cmpi slt, %5, %6 : vector<128x16xi32>
    %cst = arith.constant 5.000000e-01 : f32
    %8 = vector.broadcast %cst : f32 to vector<128x16xf32>
    %9 = arith.select %7, %0, %8 : vector<128x16xi1>, vector<128x16xf32>
    %cst_4 = arith.constant 5.000000e-01 : f32
    %10 = vector.broadcast %cst_4 : f32 to vector<128x16xf32>
    %11 = arith.select %7, %1, %10 : vector<128x16xi1>, vector<128x16xf32>
    %12 = math.log %9 : vector<128x16xf32>
    %cst_5 = arith.constant -1.000000e+02 : f32
    %13 = vector.broadcast %cst_5 : f32 to vector<128x16xf32>
    %14 = arith.maximumf %12, %13 : vector<128x16xf32>
    %cst_6 = arith.constant 0.000000e+00 : f32
    %15 = vector.broadcast %cst_6 : f32 to vector<128x16xf32>
    %16 = arith.subf %15, %9 : vector<128x16xf32>
    %17 = math.log1p %16 : vector<128x16xf32>
    %cst_7 = arith.constant -1.000000e+02 : f32
    %18 = vector.broadcast %cst_7 : f32 to vector<128x16xf32>
    %19 = arith.maximumf %17, %18 : vector<128x16xf32>
    %20 = arith.mulf %11, %14 : vector<128x16xf32>
    %cst_8 = arith.constant 1.000000e+00 : f32
    %21 = vector.broadcast %cst_8 : f32 to vector<128x16xf32>
    %22 = arith.subf %21, %11 : vector<128x16xf32>
    %23 = arith.mulf %22, %19 : vector<128x16xf32>
    %24 = arith.addf %20, %23 : vector<128x16xf32>
    %cst_9 = arith.constant 0.000000e+00 : f32
    %25 = vector.broadcast %cst_9 : f32 to vector<128x16xf32>
    %26 = arith.subf %25, %24 : vector<128x16xf32>
    %cst_10 = arith.constant 0.000000e+00 : f32
    %27 = vector.broadcast %cst_10 : f32 to vector<128x16xf32>
    %28 = arith.select %7, %26, %27 : vector<128x16xi1>, vector<128x16xf32>
    %29 = vector.shape_cast %28 : vector<128x16xf32> to vector<1x128x16xf32>
    %cst_11 = arith.constant dense<0.000000e+00> : vector<1xf32>
    %30 = vector.multi_reduction <add>, %29, %cst_11 [1, 2] : vector<1x128x16xf32> to vector<1xf32>
    %31 = vector.shape_cast %30 : vector<1xf32> to vector<1x1x1xf32>
    %32 = vector.extract %31[0, 0, 0] : f32 from vector<1x1x1xf32>
    %33 = vector.broadcast %32 : f32 to vector<1x128xf32>
    %c0_12 = arith.constant 0 : index
    %c0_13 = arith.constant 0 : index
    %34 = vector.load %arg3[%c0_12, %c0_13] : memref<1x128xf32, #tpu.memory_space<vmem>>, vector<1x128xf32>
    tpu.vector_store %arg3[%c0_12, %c0_13], %33 {strides = array<i32>} : memref<1x128xf32, #tpu.memory_space<vmem>>, vector<1x128xf32>,
    return
  }
  func.func @transform_0(%arg0: i32) -> (i32, i32) {
    %c0_i32 = arith.constant 0 : i32
    %c0_i32_0 = arith.constant 0 : i32
    return %arg0, %c0_i32 : i32, i32
  }
  func.func @transform_1(%arg0: i32) -> (i32, i32) {
    %c0_i32 = arith.constant 0 : i32
    %c0_i32_0 = arith.constant 0 : i32
    return %arg0, %c0_i32 : i32, i32
  }
  func.func @transform_2(%arg0: i32) -> (i32, i32) {
    %c0_i32 = arith.constant 0 : i32
    %c0_i32_0 = arith.constant 0 : i32
    return %arg0, %c0_i32 : i32, i32
  }
}

</mosaic_0001>

<bundles_post_ra>
// kernel: tpu_custom_call.1
= control target key start
LH: loop header
LB: loop body
LE: loop exit
PB: predicated region body
PF: predicated region fallthrough
CT: control target
= control target key end

     0   :  { %7 = vsyncpa [#allocation3], 0  ;;  %vm447_vm14 = vcmask 130048   ;;  %s1122_s0 = inlined_call_operand.vmem [shape: f32[128,16], index: 0, kind: input, shape index: {}]   ;;  %s1123_s1 = inlined_call_operand.vmem [shape: f32[128,16], index: 1, kind: input, shape index: {}]   ;;  %s1124_s2 = inlined_call_operand.hbm [shape: f32[1,128], index: 2, kind: output, shape index: {}]  }
   0x1   :  { %v12_v0 = vld [vmem:[%s1122_s0] sm:$0xff]  ;;  %v13_v1 = vld [vmem:[%s1122_s0 + $0x8] sm:$0xff]  ;;  %v14_v2 = vld [vmem:[%s1122_s0 + $0x10] sm:$0xff] }
   0x2   :  { %507 = vlog2.f32 %v12_v0  ;;  %v15_v3 = vld [vmem:[%s1122_s0 + $0x18] sm:$0xff]  ;;  %v16_v4 = vld [vmem:[%s1122_s0 + $0x20] sm:$0xff]  ;;  %v17_v5 = vld [vmem:[%s1122_s0 + $0x28] sm:$0xff]  ;;  %v641_v10 = vsub.f32 0.0, %v12_v0  ;;  %v643_v11 = vsub.f32 0.0, %v13_v1  ;;  %v645_v12 = vsub.f32 0.0, %v14_v2 }
   0x3   :  { %509 = vlog2.f32 %v13_v1  ;;  %v18_v6 = vld [vmem:[%s1122_s0 + $0x30] sm:$0xff]  ;;  %v19_v7 = vld [vmem:[%s1122_s0 + $0x38] sm:$0xff]  ;;  %v20_v8 = vld [vmem:[%s1122_s0 + $0x40] sm:$0xff]  ;;  %v656_v16 = vsub.f32 0.0, %v15_v3  ;;  %v658_v17 = vsub.f32 0.0, %v16_v4  ;;  %v660_v18 = vsub.f32 0.0, %v17_v5 }
   0x4   :  { %511 = vlog2.f32 %v14_v2  ;;  %v21_v9 = vld [vmem:[%s1122_s0 + $0x48] sm:$0xff]  ;;  %v22_v13 = vld [vmem:[%s1122_s0 + $0x50] sm:$0xff]  ;;  %v23_v14 = vld [vmem:[%s1122_s0 + $0x58] sm:$0xff]  ;;  %v668_v21 = vsub.f32 0.0, %v18_v6  ;;  %v670_v22 = vsub.f32 0.0, %v19_v7  ;;  %v194_v23 = vmul.f32 -0.5, %v641_v10 }
   0x5   :  { %513 = vlog2.f32 %v15_v3  ;;  %v24_v15 = vld [vmem:[%s1122_s0 + $0x60] sm:$0xff]  ;;  %v25_v19 = vld [vmem:[%s1122_s0 + $0x68] sm:$0xff]  ;;  %v26_v20 = vld [vmem:[%s1122_s0 + $0x70] sm:$0xff]  ;;  %v676_v26 = vsub.f32 0.0, %v20_v8  ;;  %v678_v27 = vsub.f32 0.0, %v21_v9  ;;  %v203_v28 = vmul.f32 -0.5, %v643_v11 }
   0x6   :  { %515 = vlog2.f32 %v16_v4  ;;  %v27_v25 = vld [vmem:[%s1122_s0 + $0x78] sm:$0xff]  ;;  %v681_v30 = vsub.f32 0.0, %v22_v13  ;;  %v683_v31 = vsub.f32 0.0, %v23_v14  ;;  %v685_v32 = vsub.f32 0.0, %v24_v15 }
   0x7   :  { %517 = vlog2.f32 %v17_v5  ;;  %v687_v34 = vsub.f32 0.0, %v25_v19  ;;  %v689_v35 = vsub.f32 0.0, %v26_v20  ;;  %v191_v36 = vadd.f32 1.0, %v641_v10 }
   0x8   :  { %519 = vlog2.f32 %v18_v6  ;;  %v692_v38 = vsub.f32 0.0, %v27_v25  ;;  %v195_v39 = vadd.f32 1.0, %v194_v23  ;;  %v200_v40 = vadd.f32 1.0, %v643_v11 }
   0x9   :  { %521 = vlog2.f32 %v19_v7  ;;  %v204_v42 = vadd.f32 1.0, %v203_v28  ;;  %v209_v43 = vadd.f32 1.0, %v645_v12  ;;  %v212_v44 = vmul.f32 -0.5, %v645_v12 }
   0xa   :  { %523 = vlog2.f32 %v20_v8  ;;  %v197_v47 = vand.u32 2147483647, %v641_v10  ;;  %v206_v48 = vand.u32 2147483647, %v643_v11  ;;  %v221_v52 = vmul.f32 -0.5, %v656_v16 }
   0xb   :  { %525 = vlog2.f32 %v21_v9  ;;  %v709_v55 = vmul.f32 %v195_v39, %v641_v10  ;;  %v218_v56 = vadd.f32 1.0, %v656_v16  ;;  %v713_v58 = vmul.f32 %v204_v42, %v643_v11 }
   0xc   :  { %v508_v24 = vpop.eup %507  ;;  %527 = vlog2.f32 %v22_v13  ;;  %v213_v59 = vadd.f32 1.0, %v212_v44  ;;  %v215_v60 = vand.u32 2147483647, %v645_v12  ;;  %v227_v1 = vadd.f32 1.0, %v658_v17 }
   0xd   :  { %v510_v29 = vpop.eup %509  ;;  %529 = vlog2.f32 %v23_v14  ;;  %v697_v46 = vmul.f32 0.6931472, %v508_v24  ;;  %v222_v6 = vadd.f32 1.0, %v221_v52  ;;  %v230_v9 = vmul.f32 -0.5, %v658_v17 }
   0xe   :  { %v512_v33 = vpop.eup %511  ;;  %531 = vlog2.f32 %v24_v15  ;;  %v701_v50 = vmul.f32 0.6931472, %v510_v29  ;;  %v236_v10 = vadd.f32 1.0, %v660_v18  ;;  %v734_v15 = vmul.f32 %v213_v59, %v645_v12 }
   0xf   :  { %v514_v37 = vpop.eup %513  ;;  %533 = vlog2.f32 %v25_v19  ;;  %v703_v51 = vmul.f32 0.6931472, %v512_v33  ;;  %v159_v0 = vmax.f32 %v697_v46, -100.0  ;;  %v224_v19 = vand.u32 2147483647, %v656_v16 }
  0x10   :  { %v516_v41 = vpop.eup %515  ;;  %535 = vlog2.f32 %v26_v20  ;;  %v706_v54 = vmul.f32 0.6931472, %v514_v37  ;;  %vm741_vm0 = vcmp.lt.f32.partialorder %v197_v47, 0.0004427343  ;;  %vm745_vm1 = vcmp.lt.f32.partialorder %v206_v48, 0.0004427343 }
  0x11   :  { %v518_v45 = vpop.eup %517  ;;  %537 = vlog2.f32 %v27_v25  ;;  %v716_v62 = vmul.f32 0.6931472, %v516_v41  ;;  %vm754_vm2 = vcmp.lt.f32.partialorder %v215_v60, 0.0004427343  ;;  %v231_v42 = vadd.f32 1.0, %v230_v9 }
  0x12   :  { %v520_v49 = vpop.eup %519  ;;  %539 = vlog2.f32 %v191_v36  ;;  %v718_v63 = vmul.f32 0.6931472, %v518_v45  ;;  %v245_v44 = vadd.f32 1.0, %v668_v21  ;;  %v239_v52 = vmul.f32 -0.5, %v660_v18 }
  0x13   :  { %v522_v53 = vpop.eup %521  ;;  %541 = vlog2.f32 %v200_v40  ;;  %v722_v3 = vmul.f32 0.6931472, %v520_v49  ;;  %v759_v40 = vmul.f32 %v222_v6, %v656_v16  ;;  %vm771_vm3 = vcmp.lt.f32.partialorder %v224_v19, 0.0004427343 }
  0x14   :  { %v524_v57 = vpop.eup %523  ;;  %543 = vlog2.f32 %v209_v43  ;;  %v729_v13 = vmul.f32 0.6931472, %v522_v53  ;;  %v233_v43 = vand.u32 2147483647, %v658_v17  ;;  %v248_v59 = vmul.f32 -0.5, %v668_v21 }
  0x15   :  { %v526_v61 = vpop.eup %525  ;;  %545 = vlog2.f32 %v218_v56  ;;  %v731_v14 = vmul.f32 0.6931472, %v524_v57  ;;  %v254_v60 = vadd.f32 1.0, %v670_v22  ;;  %v263_v19 = vadd.f32 1.0, %v676_v26 }
  0x16   :  { %v528_v2 = vpop.eup %527  ;;  %v737_v23 = vmul.f32 0.6931472, %v526_v61  ;;  %547 = vlog2.f32 %v227_v1  ;;  %vm787_vm4 = vcmp.lt.f32.partialorder %v233_v43, 0.0004427343  ;;  %v240_v6 = vadd.f32 1.0, %v239_v52 }
  0x17   :  { %v530_v7 = vpop.eup %529  ;;  %v749_v33 = vmul.f32 0.6931472, %v528_v2  ;;  %549 = vlog2.f32 %v236_v10  ;;  %v785_v10 = vmul.f32 %v231_v42, %v658_v17  ;;  %v249_v49 = vadd.f32 1.0, %v248_v59 }
  0x18   :  { %v532_v11 = vpop.eup %531  ;;  %1132 = vst [vmem:[#allocation5_spill] sm:$0xff] %v737_v23  ;;  %v751_v36 = vmul.f32 0.6931472, %v530_v7  ;;  %v242_v7 = vand.u32 2147483647, %v660_v18  ;;  %551 = vlog2.f32 %v245_v44  ;;  %v257_v17 = vmul.f32 -0.5, %v670_v22 }
  0x19   :  { %v534_v20 = vpop.eup %533  ;;  %1137 = vst [vmem:[#allocation6_spill] sm:$0xff] %v749_v33  ;;  %v763_v47 = vmul.f32 0.6931472, %v532_v11  ;;  %553 = vlog2.f32 %v254_v60  ;;  %v281_v59 = vadd.f32 1.0, %v681_v30  ;;  %v821_v42 = vmul.f32 %v240_v6, %v660_v18  ;;  %v29_v18 = vld [vmem:[%s1123_s1 + $0x8] sm:$0xff]  ;;  %v35_v44 = vld [vmem:[%s1123_s1 + $0x38] sm:$0xff] }
  0x1a   :  { %v536_v12 = vpop.eup %535  ;;  %1138 = vst [vmem:[#allocation7_spill] sm:$0xff] %v751_v36  ;;  %v768_v56 = vmul.f32 0.6931472, %v534_v20  ;;  %vm802_vm5 = vcmp.lt.f32.partialorder %v242_v7, 0.0004427343  ;;  %555 = vlog2.f32 %v263_v19  ;;  %v828_v20 = vmul.f32 %v249_v49, %v668_v21  ;;  %v844_v49 = vld [vmem:[%s1123_s1] sm:$0xff] }
  0x1b   :  { %v538_v41 = vpop.eup %537  ;;  %1141 = vst [vmem:[#allocation8_spill] sm:$0xff] %v763_v47  ;;  %v777_v1 = vmul.f32 0.6931472, %v536_v12  ;;  %v258_v48 = vadd.f32 1.0, %v257_v17  ;;  %v260_v37 = vand.u32 2147483647, %v670_v22  ;;  %v863_v19 = vmul.f32 %v159_v0, %v844_v49 }
  0x1c   :  { %v540_v45 = vpop.eup %539  ;;  %1142 = vst [vmem:[#allocation9_spill] sm:$0xff] %v768_v56  ;;  %v782_v9 = vmul.f32 0.6931472, %v538_v41  ;;  %v269_v24 = vand.u32 2147483647, %v676_v26  ;;  %v275_v6 = vmul.f32 -0.5, %v678_v27 }
  0x1d   :  { %v542_v53 = vpop.eup %541  ;;  %1145 = vst [vmem:[#allocation10_spill] sm:$0xff] %v777_v1  ;;  %v793_v12 = vmul.f32 0.6931472, %v540_v45  ;;  %v272_v45 = vadd.f32 1.0, %v678_v27  ;;  %vm854_vm7 = vcmp.lt.f32.partialorder %v260_v37, 0.0004427343  ;;  %v870_v17 = vmul.f32 %v258_v48, %v670_v22 }
  0x1e   :  { %v544_v61 = vpop.eup %543  ;;  %1146 = vst [vmem:[#allocation11_spill] sm:$0xff] %v782_v9  ;;  %v795_v2 = vmul.f32 0.6931472, %v542_v53  ;;  %v278_v5 = vand.u32 2147483647, %v678_v27  ;;  %v293_v4 = vmul.f32 -0.5, %v683_v31 }
  0x1f   :  { %v546_v16 = vpop.eup %545  ;;  %v797_v41 = vmul.f32 0.6931472, %v544_v61  ;;  %v251_v61 = vand.u32 2147483647, %v668_v21  ;;  %557 = vlog2.f32 %v272_v45  ;;  %v290_v21 = vadd.f32 1.0, %v683_v31 }
  0x20   :  { %v548_v53 = vpop.eup %547  ;;  %v818_v43 = vmul.f32 0.6931472, %v546_v16  ;;  %v266_v16 = vmul.f32 -0.5, %v676_v26  ;;  %559 = vlog2.f32 %v281_v59  ;;  %vm872_vm8 = vcmp.lt.f32.partialorder %v269_v24, 0.0004427343 }
  0x21   :  { %v550_v52 = vpop.eup %549  ;;  %v831_v25 = vmul.f32 0.6931472, %v548_v53  ;;  %vm835_vm6 = vcmp.lt.f32.partialorder %v251_v61, 0.0004427343  ;;  %v284_v53 = vmul.f32 -0.5, %v681_v30  ;;  %v299_v61 = vadd.f32 1.0, %v685_v32 }
  0x22   :  { %v850_v45 = vmul.f32 0.6931472, %v550_v52  ;;  %v552_v8 = vpop.eup %551  ;;  %v267_v37 = vadd.f32 1.0, %v266_v16  ;;  %v276_v9 = vadd.f32 1.0, %v275_v6  ;;  %v287_v1 = vand.u32 2147483647, %v681_v30 }
  0x23   :  { %v554_v60 = vpop.eup %553  ;;  %561 = vlog2.f32 %v290_v21  ;;  %v302_v46 = vmul.f32 -0.5, %v685_v32  ;;  %v882_v52 = vmul.f32 0.6931472, %v552_v8  ;;  %v285_v22 = vadd.f32 1.0, %v284_v53 }
  0x24   :  { %563 = vlog2.f32 %v299_v61  ;;  %v556_v24 = vpop.eup %555  ;;  %vm884_vm9 = vcmp.lt.f32.partialorder %v278_v5, 0.0004427343  ;;  %v294_v16 = vadd.f32 1.0, %v293_v4  ;;  %v296_v6 = vand.u32 2147483647, %v683_v31 }
  0x25   :  { %v311_v21 = vmul.f32 -0.5, %v687_v34  ;;  %v890_v56 = vmul.f32 0.6931472, %v554_v60  ;;  %v893_v47 = vmul.f32 %v267_v37, %v676_v26  ;;  %v305_v8 = vand.u32 2147483647, %v685_v32 }
  0x26   :  { %v308_v53 = vadd.f32 1.0, %v687_v34  ;;  %v898_v61 = vmul.f32 %v276_v9, %v678_v27  ;;  %vm900_vm10 = vcmp.lt.f32.partialorder %v287_v1, 0.0004427343  ;;  %v303_v4 = vadd.f32 1.0, %v302_v46 }
  0x27   :  { %v320_v0 = vmul.f32 -0.5, %v689_v35  ;;  %v253_v26 = vsel %vm835_vm6, %v828_v20, %v882_v52  ;;  %v909_v60 = vmul.f32 0.6931472, %v556_v24  ;;  %v912_v37 = vmul.f32 %v285_v22, %v681_v30  ;;  %v30_v52 = vld [vmem:[%s1123_s1 + $0x10] sm:$0xff] }
  0x28   :  { %v317_v27 = vadd.f32 1.0, %v689_v35  ;;  %v916_v9 = vmul.f32 %v294_v16, %v683_v31  ;;  %vm918_vm11 = vcmp.lt.f32.partialorder %v296_v6, 0.0004427343  ;;  %v312_v33 = vadd.f32 1.0, %v311_v21 }
  0x29   :  { %v558_v36 = vpop.eup %557  ;;  %v326_v23 = vadd.f32 1.0, %v692_v38  ;;  %v262_v20 = vsel %vm854_vm7, %v870_v17, %v890_v56  ;;  %vm927_vm12 = vcmp.lt.f32.partialorder %v305_v8, 0.0004427343  ;;  %565 = vlog2.f32 %v308_v53 }
  0x2a   :  { %v560_v1 = vpop.eup %559  ;;  %v314_v31 = vand.u32 2147483647, %v687_v34  ;;  %v938_v22 = vmul.f32 0.6931472, %v558_v36  ;;  %v941_v59 = vmul.f32 %v303_v4, %v685_v32  ;;  %v321_v56 = vadd.f32 1.0, %v320_v0  ;;  %v31_v36 = vld [vmem:[%s1123_s1 + $0x18] sm:$0xff] }
  0x2b   :  { %v329_v17 = vmul.f32 -0.5, %v692_v38  ;;  %v271_v24 = vsel %vm872_vm8, %v893_v47, %v909_v60  ;;  %v283_v16 = vmul.f32 0.6931472, %v560_v1  ;;  %567 = vlog2.f32 %v317_v27 }
  0x2c   :  { %v323_v6 = vand.u32 2147483647, %v689_v35  ;;  %v953_v32 = vmul.f32 %v312_v33, %v687_v34  ;;  %569 = vlog2.f32 %v326_v23  ;;  %v1165_v0 = vsel %vm741_vm0, %v709_v55, %v793_v12  ;;  %v32_v55 = vld [vmem:[%s1123_s1 + $0x20] sm:$0xff] }
  0x2d   :  { %v562_v21 = vpop.eup %561  ;;  %v335_v7 = vmax.f32 %v1165_v0, -100.0  ;;  %v1166_v47 = vsel %vm745_vm1, %v713_v58, %v795_v2  ;;  %v1167_v34 = vsel %vm754_vm2, %v734_v15, %v797_v41  ;;  %v367_v23 = vsub.f32 1.0, %v844_v49 }
  0x2e   :  { %v336_v8 = vmax.f32 %v1166_v47, -100.0  ;;  %v564_v53 = vpop.eup %563  ;;  %v337_v33 = vmax.f32 %v1167_v34, -100.0  ;;  %v368_v28 = vsub.f32 1.0, %v29_v18  ;;  %v369_v4 = vsub.f32 1.0, %v30_v52 }
  0x2f   :  { %v280_v58 = vsel %vm884_vm9, %v898_v61, %v938_v22  ;;  %v979_v29 = vmul.f32 %v321_v56, %v689_v35  ;;  %v330_v39 = vadd.f32 1.0, %v329_v17  ;;  %v332_v15 = vand.u32 2147483647, %v692_v38  ;;  %v33_v61 = vld [vmem:[%s1123_s1 + $0x28] sm:$0xff] }
  0x30   :  { %v289_v2 = vsel %vm900_vm10, %v912_v37, %v283_v16  ;;  %v292_v12 = vmul.f32 0.6931472, %v562_v21  ;;  %vm985_vm13 = vcmp.lt.f32.partialorder %v314_v31, 0.0004427343  ;;  %v1170_v49 = vsel %vm771_vm3, %v759_v40, %v818_v43  ;;  %v34_v40 = vld [vmem:[%s1123_s1 + $0x30] sm:$0xff] }
  0x31   :  { %v338_v48 = vmax.f32 %v1170_v49, -100.0  ;;  %v370_v35 = vsub.f32 1.0, %v31_v36  ;;  %v301_v60 = vmul.f32 0.6931472, %v564_v53  ;;  %v1171_v5 = vsel %vm787_vm4, %v785_v10, %v831_v25 }
  0x32   :  { %v339_v37 = vmax.f32 %v1171_v5, -100.0  ;;  %v1172_v27 = vmax.f32 %v701_v50, -100.0  ;;  %v1173_v57 = vmax.f32 %v703_v51, -100.0  ;;  %v371_v43 = vsub.f32 1.0, %v32_v55 }
  0x33   :  { %v383_v22 = vmul.f32 %v367_v23, %v335_v7  ;;  %v384_v56 = vmul.f32 %v368_v28, %v336_v8  ;;  %v385_v17 = vmul.f32 %v369_v4, %v337_v33  ;;  %v1010_v11 = vmul.f32 %v330_v39, %v692_v38 }
  0x34   :  { %v352_v1 = vmul.f32 %v1172_v27, %v29_v18  ;;  %v353_v31 = vmul.f32 %v1173_v57, %v30_v52  ;;  %v1174_v50 = vsel %vm802_vm5, %v821_v42, %v850_v45  ;;  %v341_v10 = vmax.f32 %v253_v26, -100.0  ;;  %v566_v18 = vpop.eup %565  ;;  %v39_v57 = vld [vmem:[%s1123_s1 + $0x58] sm:$0xff] }
  0x35   :  { %v340_v25 = vmax.f32 %v1174_v50, -100.0  ;;  %v342_v51 = vmax.f32 %v262_v20, -100.0  ;;  %v298_v52 = vsel %vm918_vm11, %v916_v9, %v292_v12  ;;  %v1175_v16 = vmax.f32 %v706_v54, -100.0  ;;  %v568_v46 = vpop.eup %567  ;;  %v36_v54 = vld [vmem:[%s1123_s1 + $0x40] sm:$0xff]  ;;  %v1189_v9 = vld [vmem:[#allocation7_spill] sm:$0xff] }
  0x36   :  { %v372_v0 = vsub.f32 1.0, %v33_v61  ;;  %v386_v38 = vmul.f32 %v370_v35, %v338_v48  ;;  %v307_v42 = vsel %vm927_vm12, %v941_v59, %v301_v60  ;;  %v343_v45 = vmax.f32 %v271_v24, -100.0  ;;  %v570_v59 = vpop.eup %569 }
  0x37   :  { %v354_v21 = vmul.f32 %v1175_v16, %v31_v36  ;;  %v1176_v26 = vmax.f32 %v716_v62, -100.0  ;;  %v373_v7 = vsub.f32 1.0, %v34_v40  ;;  %vm1033_vm15 = vcmp.lt.f32.partialorder %v323_v6, 0.0004427343 }
  0x38   :  { %v387_v36 = vmul.f32 %v371_v43, %v339_v37  ;;  %v399_v47 = vadd.f32 %v383_v22, %v863_v19  ;;  %v400_v8 = vadd.f32 %v384_v56, %v352_v1  ;;  %v401_v30 = vadd.f32 %v385_v17, %v353_v31  ;;  %v37_v19 = vld [vmem:[%s1123_s1 + $0x48] sm:$0xff] }
  0x39   :  { %v355_v20 = vmul.f32 %v1176_v26, %v32_v55  ;;  %v310_v24 = vmul.f32 0.6931472, %v566_v18  ;;  %v344_v53 = vmax.f32 %v280_v58, -100.0  ;;  %v345_v62 = vmax.f32 %v289_v2, -100.0  ;;  %v1185_v56 = vld [vmem:[#allocation5_spill] sm:$0xff] }
  0x3a   :  { %v346_v34 = vmax.f32 %v298_v52, -100.0  ;;  %vm1038_vm0 = vcmp.lt.f32.partialorder %v332_v15, 0.0004427343  ;;  %v1181_v23 = vmax.f32 %v718_v63, -100.0  ;;  %v374_v28 = vsub.f32 1.0, %v35_v44  ;;  %v38_v15 = vld [vmem:[%s1123_s1 + $0x50] sm:$0xff] }
  0x3b   :  { %v388_v4 = vmul.f32 %v372_v0, %v340_v25  ;;  %v402_v55 = vadd.f32 %v386_v38, %v354_v21  ;;  %v347_v39 = vmax.f32 %v307_v42, -100.0  ;;  %v1182_v12 = vmax.f32 %v722_v3, -100.0  ;;  %v41_v38 = vld [vmem:[%s1123_s1 + $0x68] sm:$0xff] }
  0x3c   :  { %v356_v6 = vmul.f32 %v1181_v23, %v33_v61  ;;  %v375_v2 = vsub.f32 1.0, %v36_v54  ;;  %v389_v49 = vmul.f32 %v373_v7, %v341_v10  ;;  %v403_v48 = vadd.f32 %v387_v36, %v355_v20  ;;  %v1187_v7 = vld [vmem:[#allocation6_spill] sm:$0xff] }
  0x3d   :  { %v357_v58 = vmul.f32 %v1182_v12, %v34_v40  ;;  %v415_v63 = vsub.f32 0.0, %v399_v47  ;;  %v416_v35 = vsub.f32 0.0, %v400_v8  ;;  %v417_v61 = vsub.f32 0.0, %v401_v30  ;;  %v42_v8 = vld [vmem:[%s1123_s1 + $0x70] sm:$0xff] }
  0x3e   :  { %v316_v60 = vsel %vm985_vm13, %v953_v32, %v310_v24  ;;  %v319_v5 = vmul.f32 0.6931472, %v568_v46  ;;  %v1183_v37 = vmax.f32 %v729_v13, -100.0  ;;  %v1184_v3 = vmax.f32 %v731_v14, -100.0  ;;  %v40_v13 = vld [vmem:[%s1123_s1 + $0x60] sm:$0xff] }
  0x3f   :  { %v376_v31 = vsub.f32 1.0, %v37_v19  ;;  %v390_v40 = vmul.f32 %v374_v28, %v342_v51  ;;  %v404_v43 = vadd.f32 %v388_v4, %v356_v6  ;;  %v418_v22 = vsub.f32 0.0, %v402_v55  ;;  %v43_v55 = vld [vmem:[%s1123_s1 + $0x78] sm:$0xff]  ;;  %s595_s1 = smov [#allocation2]  }
  0x40   :  { %v358_v27 = vmul.f32 %v1183_v37, %v35_v44  ;;  %v359_v1 = vmul.f32 %v1184_v3, %v36_v54  ;;  %v1186_v17 = vmax.f32 %v1185_v56, -100.0  ;;  %v377_v41 = vsub.f32 1.0, %v38_v15  ;;  %v1193_v37 = vld [vmem:[#allocation9_spill] sm:$0xff]  ;;  %s496_s15 = sshll.u32 %s595_s1, 4  ;;  %s497_s15 = int_to_ptr.vmem [resolvable:$true] %s496_s15 }
  0x41   :  { %v391_v32 = vmul.f32 %v375_v2, %v343_v45  ;;  %v405_v25 = vadd.f32 %v389_v49, %v357_v58  ;;  %v419_v14 = vsub.f32 0.0, %v403_v48  ;;  %v448_v10 = vsel %vm447_vm14, %v415_v63, 0.0  ;;  %v1191_v49 = vld [vmem:[#allocation8_spill] sm:$0xff]  ;;  %s571_s17 = scalar_lea.vmem %s497_s15, 16  ;;  %s575_s18 = scalar_lea.vmem %s497_s15, 32 }
  0x42   :  { %v360_v50 = vmul.f32 %v1186_v17, %v37_v19  ;;  %v449_v18 = vsel %vm447_vm14, %v416_v35, 0.0  ;;  %v451_v52 = vsel %vm447_vm14, %v417_v61, 0.0  ;;  %v328_v51 = vmul.f32 0.6931472, %v570_v59  ;;  %p572_p0 = scmp.ne.s32.totalorder %s497_s15, %s571_s17  ;;  %p576_p1 = scmp.lt.s32.totalorder %s497_s15, %s497_s15 }
  0x43   :  { %v348_v16 = vmax.f32 %v316_v60, -100.0  ;;  %v378_v21 = vsub.f32 1.0, %v39_v57  ;;  %v450_v0 = vadd.f32 %v449_v18, %v448_v10  ;;  %v392_v44 = vmul.f32 %v376_v31, %v344_v53  ;;  %p577_p2 = scmp.lt.s32.totalorder %s575_s18, %s571_s17 }
  0x44   :  { %v406_v42 = vadd.f32 %v390_v40, %v358_v27  ;;  %v420_v45 = vsub.f32 0.0, %v404_v43  ;;  %v453_v26 = vsel %vm447_vm14, %v418_v22, 0.0  ;;  %v325_v20 = vsel %vm1033_vm15, %v979_v29, %v319_v5  ;;  %v1195_v22 = vld [vmem:[#allocation10_spill] sm:$0xff] }
  0x45   :  { %v1188_v46 = vmax.f32 %v1187_v7, -100.0  ;;  %v379_v36 = vsub.f32 1.0, %v40_v13  ;;  %v452_v47 = vadd.f32 %v451_v52, %v450_v0  ;;  %v393_v30 = vmul.f32 %v377_v41, %v345_v62  ;;  %p578_p3 = por %p577_p2, %p576_p1 }
  0x46   :  { %v407_v59 = vadd.f32 %v391_v32, %v359_v1  ;;  %v421_v24 = vsub.f32 0.0, %v405_v25  ;;  %v455_v53 = vsel %vm447_vm14, %v419_v14, 0.0  ;;  %v334_v23 = vsel %vm1038_vm0, %v1010_v11, %v328_v51 }
  0x47   :  { %v361_v54 = vmul.f32 %v1188_v46, %v38_v15  ;;  %v1190_v29 = vmax.f32 %v1189_v9, -100.0  ;;  %v380_v28 = vsub.f32 1.0, %v41_v38  ;;  %v454_v4 = vadd.f32 %v453_v26, %v452_v47  ;;  %p579_p4 = pnand %p578_p3, %p572_p0 }
  0x48   :  { %v394_v19 = vmul.f32 %v378_v21, %v346_v34  ;;  %v408_v12 = vadd.f32 %v392_v44, %v360_v50  ;;  %v422_v62 = vsub.f32 0.0, %v406_v42  ;;  %v457_v58 = vsel %vm447_vm14, %v420_v45, 0.0 }
  0x49   :  { %v362_v6 = vmul.f32 %v1190_v29, %v39_v57  ;;  %v349_v2 = vmax.f32 %v325_v20, -100.0  ;;  %v1192_v15 = vmax.f32 %v1191_v49, -100.0  ;;  %v381_v33 = vsub.f32 1.0, %v42_v8 }
  0x4a   :  { %v456_v11 = vadd.f32 %v455_v53, %v454_v4  ;;  %v395_v63 = vmul.f32 %v379_v36, %v347_v39  ;;  %v409_v35 = vadd.f32 %v393_v30, %v361_v54  ;;  %v423_v61 = vsub.f32 0.0, %v407_v59 }
  0x4b   :  { %v363_v48 = vmul.f32 %v1192_v15, %v40_v13  ;;  %v459_v60 = vsel %vm447_vm14, %v421_v24, 0.0  ;;  %v350_v5 = vmax.f32 %v334_v23, -100.0  ;;  %v1194_v27 = vmax.f32 %v1193_v37, -100.0  ;;  %v1197_v13 = vld [vmem:[#allocation11_spill] sm:$0xff] }
  0x4c   :  { %v382_v34 = vsub.f32 1.0, %v43_v55  ;;  %v458_v1 = vadd.f32 %v457_v58, %v456_v11  ;;  %v396_v57 = vmul.f32 %v380_v28, %v348_v16  ;;  %v410_v31 = vadd.f32 %v394_v19, %v362_v6 }
  0x4d   :  { %v364_v3 = vmul.f32 %v1194_v27, %v41_v38  ;;  %v424_v40 = vsub.f32 0.0, %v408_v12  ;;  %v461_v43 = vsel %vm447_vm14, %v422_v62, 0.0  ;;  %v1196_v56 = vmax.f32 %v1195_v22, -100.0 }
  0x4e   :  { %v460_v50 = vadd.f32 %v459_v60, %v458_v1  ;;  %v397_v39 = vmul.f32 %v381_v33, %v349_v2  ;;  %v411_v41 = vadd.f32 %v395_v63, %v363_v48  ;;  %v425_v32 = vsub.f32 0.0, %v409_v35 }
  0x4f   :  { %v365_v17 = vmul.f32 %v1196_v56, %v42_v8  ;;  %v463_v25 = vsel %vm447_vm14, %v423_v61, 0.0  ;;  %v1198_v14 = vmax.f32 %v1197_v13, -100.0  ;;  %v398_v52 = vmul.f32 %v382_v34, %v350_v5 }
  0x50   :  { %v462_v18 = vadd.f32 %v461_v43, %v460_v50  ;;  %v412_v51 = vadd.f32 %v396_v57, %v364_v3  ;;  %v426_v16 = vsub.f32 0.0, %v410_v31  ;;  %v465_v21 = vsel %vm447_vm14, %v424_v40, 0.0 }
  0x51   :  { %v366_v10 = vmul.f32 %v1198_v14, %v43_v55  ;;  %v413_v38 = vadd.f32 %v397_v39, %v365_v17  ;;  %v427_v44 = vsub.f32 0.0, %v411_v41  ;;  %v467_v42 = vsel %vm447_vm14, %v425_v32, 0.0 }
  0x52   :  { %v464_v0 = vadd.f32 %v463_v25, %v462_v18  ;;  %v428_v20 = vsub.f32 0.0, %v412_v51  ;;  %v469_v7 = vsel %vm447_vm14, %v426_v16, 0.0 }
  0x53   :  { %v414_v26 = vadd.f32 %v398_v52, %v366_v10  ;;  %v429_v54 = vsub.f32 0.0, %v413_v38  ;;  %v471_v36 = vsel %vm447_vm14, %v427_v44, 0.0 }
  0x54   :  { %v466_v45 = vadd.f32 %v465_v21, %v464_v0  ;;  %v473_v30 = vsel %vm447_vm14, %v428_v20, 0.0 }
  0x55   :  { %v430_v8 = vsub.f32 0.0, %v414_v26  ;;  %v475_v24 = vsel %vm447_vm14, %v429_v54, 0.0 }
  0x56   :  { %v468_v46 = vadd.f32 %v467_v42, %v466_v45 }
  0x57   :  { %v477_v23 = vsel %vm447_vm14, %v430_v8, 0.0 }
  0x58   :  { %v470_v47 = vadd.f32 %v469_v7, %v468_v46 }
  0x5a   :  { %v472_v59 = vadd.f32 %v471_v36, %v470_v47 }
  0x5c   :  { %v474_v53 = vadd.f32 %v473_v30, %v472_v59 }
  0x5e   :  { %v476_v9 = vadd.f32 %v475_v24, %v474_v53 }
  0x60   :  { %v478_v29 = vadd.f32 %v477_v23, %v476_v9 }
  0x62   :  { %479 = vadd.xlane.f32.xlu0 %v478_v29 }
  0xef   :  { %v480_v6 = vpop.xlane.xlu0 %479 }
  0xf0   :  { %v481_v28 = vrot.slane %v480_v6, 4 }
  0xf2   :  { %v482_v4 = vadd.f32 %v481_v28, %v480_v6 }
  0xf4   :  { %v483_v55 = vrot.slane %v482_v4, 2 }
  0xf6   :  { %v484_v19 = vadd.f32 %v483_v55, %v482_v4 }
  0xf8   :  { %v485_v12 = vrot.slane %v484_v19, 1 }
  0xfa   :  { %v486_v62 = vadd.f32 %v485_v12, %v484_v19 }
  0xfc   :  { %504 = vpush %v486_v62 }
 0x12d   :  { %s505_s16 = spop %504 }
 0x12e   :  { %v488_v58 = vstv %s505_s16 }
 0x12f   :  { %489 = vst [vmem:[#allocation2] sm:$0x1] %v488_v58 }
 0x130   :  { %582 = shalt.err (!%p579_p4)
}
 0x131   :  { %s583_s21 = scalar_lea.hbm %s1124_s2, 16 }
 0x132   :  { %p584_p5 = scmp.ne.s32.totalorder %s1124_s2, %s583_s21  ;;  %p587_p6 = scmp.lt.u32.totalorder %s583_s21, %s1124_s2 }
 0x134   :  { %p589_p7 = pnand %p587_p6, %p584_p5 }
 0x136   :  { %592 = shalt.err (!%p589_p7)
}
 0x137   :  { %499 = dma.vmem_to_hbm [thread:$0]  %s497_s15, 16, %s1124_s2, [#allocation3]  }
 0x138   :  { %593 = dma.done.wait [#allocation3], 16  }
 0x139   :  { %594 = vsyncadd [#allocation3], 4294967280 }
 0x13a   :  { %503 = vsyncpa [#allocation3], 1 }

</bundles_post_ra>
